<compile_context>
chip_gen: v5e
topology: v5e:2x2
jax: 0.10.0
libtpu: 0.0.40
codegen_flags: <defaults>
</compile_context>

<pallas_src>
import jax
import jax.numpy as jnp
from jax.experimental import pallas as pl
from jax.experimental.pallas import tpu as pltpu

B, CIN, H, W = 4, 1, 5, 5
K = 2                                  # kernel size
P = K - 1                              # halo width (=1)
OH, OW = H + K - 1, W + K - 1          # stride-1 transposed-conv output: 6 x 6


def convt_leaky_kernel(w_ref, b_ref, x_ref, o_ref):
    # w_ref : SMEM (K*K,)   -- raw ConvTranspose2d weight, row-major (UNflipped)
    # b_ref : SMEM (1,)     -- bias
    # x_ref : VMEM (B, H, W)
    # o_ref : VMEM (B, OH, OW)
    #
    # Transposed conv (stride=1) == correlation of the zero-padded input with
    # the spatially flipped kernel:
    #   out[b,p,q] = bias + sum_{ki,kj} w[ki,kj] * xpad[b, p+P-ki, q+P-kj]

    # Hoist scalar SMEM reads so the sld's issue early, off the FMA chain.
    w00 = w_ref[0]
    w01 = w_ref[1]
    w10 = w_ref[2]
    w11 = w_ref[3]
    b = b_ref[0]

    # Single VMEM load; build the zero halo entirely in registers.
    x = x_ref[...]                                     # (B, H, W) f32
    xp = jnp.pad(x, ((0, 0), (P, P), (P, P)))          # (B, H+2P, W+2P)

    # Four taps as static register slices; kernel flip folded into indices;
    # bias folded into the accumulator seed.
    acc = b + w11 * xp[:, 0:OH, 0:OW]
    acc = acc + w10 * xp[:, 0:OH, P:P + OW]
    acc = acc + w01 * xp[:, P:P + OH, 0:OW]
    acc = acc + w00 * xp[:, P:P + OH, P:P + OW]

    # where(t > -5, t, t * -0.55); single VMEM store.
    o_ref[...] = jnp.where(acc > -5.0, acc, acc * -0.55)


@jax.jit
def model_forward(x_nchw, weight, bias):
    """x_nchw: (B,1,H,W); weight: (1,1,K,K) (PyTorch ConvTranspose2d layout);
    bias: (1,).  Returns (B,1,OH,OW)."""
    w_flat = weight.reshape(K * K).astype(jnp.float32)      # (4,) SMEM scalars
    b = bias.astype(jnp.float32)                            # (1,)
    x = x_nchw.astype(jnp.float32).reshape(B, H, W)         # metadata-only squeeze

    y = pl.pallas_call(
        convt_leaky_kernel,
        out_shape=jax.ShapeDtypeStruct((B, OH, OW), jnp.float32),
        in_specs=[
            pl.BlockSpec(memory_space=pltpu.MemorySpace.SMEM),  # weight scalars
            pl.BlockSpec(memory_space=pltpu.MemorySpace.SMEM),  # bias
            pl.BlockSpec(memory_space=pltpu.MemorySpace.VMEM),  # (B,H,W) input
        ],
        out_specs=pl.BlockSpec(memory_space=pltpu.MemorySpace.VMEM),
    )(w_flat, b, x)

    return y.reshape(B, CIN, OH, OW)                        # metadata-only unsqueeze


def reference_forward(x_nchw, weight, bias):
    """Pure-JAX reference using the scatter-add definition of ConvTranspose2d."""
    x = x_nchw[:, 0, :, :].astype(jnp.float32)
    w = weight[0, 0].astype(jnp.float32)
    out = jnp.zeros((B, OH, OW), jnp.float32)
    for i in range(H):
        for j in range(W):
            out = out.at[:, i:i + K, j:j + K].add(x[:, i, j][:, None, None] * w)
    t1 = out + bias[0]
    t4 = jnp.where(t1 > -5.0, t1, t1 * -0.55)
    return t4.reshape(B, 1, OH, OW)


if __name__ == "__main__":
    key = jax.random.PRNGKey(0)
    k_x, k_w, k_b = jax.random.split(key, 3)

    # Parameters per ConvTranspose2d(1, 1, 2): weight (1,1,2,2), bias (1,)
    weight = jax.random.normal(k_w, (1, 1, K, K), dtype=jnp.float32) * 0.5
    bias = jax.random.normal(k_b, (1,), dtype=jnp.float32) * 0.1

    # Input per the module: torch.randn(4, 1, 5, 5)
    x = jax.random.normal(k_x, (B, CIN, H, W), dtype=jnp.float32)

    y = jax.block_until_ready(model_forward(x, weight, bias))

    y_ref = reference_forward(x, weight, bias)
    assert y.shape == (B, CIN, OH, OW)
    assert jnp.allclose(y, y_ref, atol=1e-5, rtol=1e-5), "mismatch vs reference"

    print("KERNEL_OK")
</pallas_src>

<mosaic_0001>
module attributes {stable_mosaic.version = 11 : i64} {
  func.func @convt_leaky_kernel(%arg0: memref<4xf32, #tpu.memory_space<smem>>, %arg1: memref<1xf32, #tpu.memory_space<smem>>, %arg2: memref<4x5x5xf32, #tpu.memory_space<vmem>>, %arg3: memref<4x6x6xf32, #tpu.memory_space<vmem>>) attributes {dimension_semantics = [], scalar_prefetch = 0 : i64, scratch_operands = 0 : i64, tpu.core_type = #tpu.core_type<tc>} {
    %c0 = arith.constant 0 : index
    %0 = memref.load %arg0[%c0] : memref<4xf32, #tpu.memory_space<smem>>
    %c1 = arith.constant 1 : index
    %1 = memref.load %arg0[%c1] : memref<4xf32, #tpu.memory_space<smem>>
    %c2 = arith.constant 2 : index
    %2 = memref.load %arg0[%c2] : memref<4xf32, #tpu.memory_space<smem>>
    %c3 = arith.constant 3 : index
    %3 = memref.load %arg0[%c3] : memref<4xf32, #tpu.memory_space<smem>>
    %c0_0 = arith.constant 0 : index
    %4 = memref.load %arg1[%c0_0] : memref<1xf32, #tpu.memory_space<smem>>
    %c0_1 = arith.constant 0 : index
    %c0_2 = arith.constant 0 : index
    %c0_3 = arith.constant 0 : index
    %5 = vector.load %arg2[%c0_1, %c0_2, %c0_3] : memref<4x5x5xf32, #tpu.memory_space<vmem>>, vector<4x5x5xf32>
    %c0_i32 = arith.constant 0 : i32
    %6 = arith.sitofp %c0_i32 : i32 to f32
    %7 = vector.broadcast %6 : f32 to vector<4x1x5xf32>
    %8 = tpu.concatenate %7, %5 in 1 : vector<4x1x5xf32>, vector<4x5x5xf32> -> vector<4x6x5xf32>
    %9 = vector.broadcast %6 : f32 to vector<4x1x5xf32>
    %10 = tpu.concatenate %8, %9 in 1 : vector<4x6x5xf32>, vector<4x1x5xf32> -> vector<4x7x5xf32>
    %11 = vector.broadcast %6 : f32 to vector<4x7x1xf32>
    %12 = tpu.concatenate %11, %10 in 2 : vector<4x7x1xf32>, vector<4x7x5xf32> -> vector<4x7x6xf32>
    %13 = vector.broadcast %6 : f32 to vector<4x7x1xf32>
    %14 = tpu.concatenate %12, %13 in 2 : vector<4x7x6xf32>, vector<4x7x1xf32> -> vector<4x7x7xf32>
    %15 = vector.extract_strided_slice %14 {offsets = [0, 0, 0], sizes = [4, 6, 6], strides = [1, 1, 1]} : vector<4x7x7xf32> to vector<4x6x6xf32>
    %16 = vector.broadcast %3 : f32 to vector<4x6x6xf32>
    %17 = arith.mulf %16, %15 : vector<4x6x6xf32>
    %18 = vector.broadcast %4 : f32 to vector<4x6x6xf32>
    %19 = arith.addf %18, %17 : vector<4x6x6xf32>
    %20 = vector.extract_strided_slice %14 {offsets = [0, 0, 1], sizes = [4, 6, 6], strides = [1, 1, 1]} : vector<4x7x7xf32> to vector<4x6x6xf32>
    %21 = vector.broadcast %2 : f32 to vector<4x6x6xf32>
    %22 = arith.mulf %21, %20 : vector<4x6x6xf32>
    %23 = arith.addf %19, %22 : vector<4x6x6xf32>
    %24 = vector.extract_strided_slice %14 {offsets = [0, 1, 0], sizes = [4, 6, 6], strides = [1, 1, 1]} : vector<4x7x7xf32> to vector<4x6x6xf32>
    %25 = vector.broadcast %1 : f32 to vector<4x6x6xf32>
    %26 = arith.mulf %25, %24 : vector<4x6x6xf32>
    %27 = arith.addf %23, %26 : vector<4x6x6xf32>
    %28 = vector.extract_strided_slice %14 {offsets = [0, 1, 1], sizes = [4, 6, 6], strides = [1, 1, 1]} : vector<4x7x7xf32> to vector<4x6x6xf32>
    %29 = vector.broadcast %0 : f32 to vector<4x6x6xf32>
    %30 = arith.mulf %29, %28 : vector<4x6x6xf32>
    %31 = arith.addf %27, %30 : vector<4x6x6xf32>
    %cst = arith.constant -5.000000e+00 : f32
    %32 = vector.broadcast %cst : f32 to vector<4x6x6xf32>
    %33 = arith.cmpf ogt, %31, %32 : vector<4x6x6xf32>
    %cst_4 = arith.constant -5.500000e-01 : f32
    %34 = vector.broadcast %cst_4 : f32 to vector<4x6x6xf32>
    %35 = arith.mulf %31, %34 : vector<4x6x6xf32>
    %36 = arith.select %33, %31, %35 : vector<4x6x6xi1>, vector<4x6x6xf32>
    %c0_5 = arith.constant 0 : index
    %c0_6 = arith.constant 0 : index
    %c0_7 = arith.constant 0 : index
    %37 = vector.load %arg3[%c0_5, %c0_6, %c0_7] : memref<4x6x6xf32, #tpu.memory_space<vmem>>, vector<4x6x6xf32>
    tpu.vector_store %arg3[%c0_5, %c0_6, %c0_7], %36 {strides = array<i32>} : memref<4x6x6xf32, #tpu.memory_space<vmem>>, vector<4x6x6xf32>,
    return
  }
}

</mosaic_0001>

<bundles_post_ra>
// kernel: model_forward.1
= control target key start
LH: loop header
LB: loop body
LE: loop exit
PB: predicated region body
PF: predicated region fallthrough
CT: control target
= control target key end

     0   :  { %9 = vsyncpa [#allocation4], 0  ;;  %s212_s15 = smov [#allocation3]   ;;  %s291_s0 = inlined_call_operand.vmem [shape: f32[4], index: 0, kind: input, shape index: {}]   ;;  %s292_s1 = inlined_call_operand.<no memory space> [shape: f32[1], index: 1, kind: input, shape index: {}]   ;;  %s293_s2 = inlined_call_operand.vmem [shape: f32[4,5,5], index: 2, kind: input, shape index: {}]   ;;  %s294_s3 = inlined_call_operand.vmem [shape: f32[4,6,6], index: 3, kind: output, shape index: {}]  }
   0x1   :  { %s15_s14 = sshll.u32 %s291_s0, 4  ;;  %s16_s14 = int_to_ptr.vmem [resolvable:$true] %s15_s14 }
   0x2   :  { %18 = dma.vmem_to_smem %s16_s14, 16, %s212_s15, [#allocation4]  }
   0x3   :  { %210 = dma.done.wait [#allocation4], 16  }
   0x4   :  { %211 = vsyncadd [#allocation4], 4294967280 }
   0x5   :  { %27 = sfence }
   0x6   :  { %v35_v0 = vld [vmem:[%s293_s2 + $0x10] sm:$0x1f]  ;;  %vm49_vm0 = vcmask 1040384   ;;  %vm54_vm1 = vcmask 1045504   ;;  %v33_v2 = vld [vmem:[%s293_s2] sm:$0x1f]  ;;  %v90_v45 = vstv %s292_s1 }
   0x7   :  { %v43_v1 = vrot.slane %v35_v0, 7  ;;  %v36_v3 = vld [vmem:[%s293_s2 + $0x18] sm:$0x1f]  ;;  %v41_v4 = vrot.slane %v33_v2, 7  ;;  %v34_v5 = vld [vmem:[%s293_s2 + $0x8] sm:$0x1f] }
   0x8   :  { %v44_v7 = vrot.slane %v36_v3, 7  ;;  %v42_v10 = vrot.slane %v34_v5, 7  ;;  %s213_s23 = smov 1   ;;  %s193_s2 = sld [smem:[#allocation3 + $0x2]]  ;;  %vm75_vm2 = vcmask 7168   ;;  %vm80_vm3 = vcmask 48128  }
   0x9   :  { %v52_v6 = vsel %vm49_vm0, 0.0, %v43_v1  ;;  %v50_v9 = vsel %vm49_vm0, 0.0, %v41_v4  ;;  %s28_s24 = sld [smem:[#allocation3]]  ;;  %s214_s25 = smov 127   ;;  %vm182_vm4 = vcmask 46080  }
   0xa   :  { %v57_v8 = vsel %vm54_vm1, %v52_v6, 0.0  ;;  %v55_v11 = vsel %vm54_vm1, %v50_v9, 0.0  ;;  %v53_v12 = vsel %vm49_vm0, 0.0, %v44_v7  ;;  %v51_v13 = vsel %vm49_vm0, 0.0, %v42_v10  ;;  %s194_s26 = sld [smem:[#allocation3 + $0x3]] }
   0xb   :  { %67 = vrot.lane.b32.xlu1 %v57_v8, %s213_s23  ;;  %63 = vrot.lane.b32.xlu0 %v55_v11, %s213_s23  ;;  %v58_v14 = vsel %vm54_vm1, %v53_v12, 0.0  ;;  %v56_v15 = vsel %vm54_vm1, %v51_v13, 0.0  ;;  %s192_s27 = sld [smem:[#allocation3 + $0x1]] }
   0xe   :  { %v95_v17 = vstv %s193_s2 }
   0xf   :  { %v141_v32 = vstv %s28_s24 }
  0x10   :  { %v85_v43 = vstv %s194_s26 }
  0x11   :  { %v120_v47 = vstv %s192_s27 }
  0x13   :  { %69 = vrot.lane.b32.xlu1 %v58_v14, %s213_s23  ;;  %65 = vrot.lane.b32.xlu0 %v56_v15, %s213_s23 }
  0x7d   :  { %v68_v16 = vpop.permute.xlu1 %67  ;;  %v64_v19 = vpop.permute.xlu0 %63 }
  0x7e   :  { %v78_v18 = vsel %vm75_vm2, 0.0, %v68_v16  ;;  %v76_v21 = vsel %vm75_vm2, 0.0, %v64_v19 }
  0x7f   :  { %v260_v20 = vsel %vm80_vm3, %v78_v18, 0.0  ;;  %v81_v22 = vsel %vm80_vm3, %v76_v21, 0.0 }
  0x80   :  { %v98_v23 = vmul.f32 %v95_v17, %v260_v20  ;;  %v96_v24 = vmul.f32 %v95_v17, %v81_v22  ;;  %v144_v36 = vmul.f32 %v141_v32, %v260_v20  ;;  %v142_v37 = vmul.f32 %v141_v32, %v81_v22 }
  0x81   :  { %v86_v44 = vmul.f32 %v85_v43, %v81_v22  ;;  %v121_v49 = vmul.f32 %v120_v47, %v81_v22  ;;  %v88_v62 = vmul.f32 %v85_v43, %v260_v20  ;;  %v123_v7 = vmul.f32 %v120_v47, %v260_v20 }
  0x82   :  { %108 = vrot.lane.b32.xlu0 %v98_v23, %s214_s25  ;;  %104 = vrot.lane.b32.xlu2 %v96_v24, %s214_s25  ;;  %v152_v38 = vrot.slane %v144_v36, 1  ;;  %v150_v39 = vrot.slane %v142_v37, 1 }
  0x83   :  { %v91_v48 = vadd.f32 %v90_v45, %v86_v44  ;;  %v129_v51 = vrot.slane %v121_v49, 1  ;;  %v93_v4 = vadd.f32 %v90_v45, %v88_v62  ;;  %v131_v15 = vrot.slane %v123_v7, 1 }
  0x85   :  { %v70_v25 = vpop.permute.xlu1 %69  ;;  %v66_v27 = vpop.permute.xlu0 %65 }
  0x86   :  { %v79_v26 = vsel %vm75_vm2, 0.0, %v70_v25  ;;  %v77_v29 = vsel %vm75_vm2, 0.0, %v66_v27 }
  0x87   :  { %v84_v28 = vsel %vm80_vm3, %v79_v26, 0.0  ;;  %v82_v30 = vsel %vm80_vm3, %v77_v29, 0.0 }
  0x88   :  { %v99_v31 = vmul.f32 %v95_v17, %v84_v28  ;;  %v97_v33 = vmul.f32 %v95_v17, %v82_v30  ;;  %v143_v34 = vmul.f32 %v141_v32, %v82_v30  ;;  %v145_v40 = vmul.f32 %v141_v32, %v84_v28 }
  0x89   :  { %v87_v57 = vmul.f32 %v85_v43, %v82_v30  ;;  %v89_v59 = vmul.f32 %v85_v43, %v84_v28  ;;  %v122_v61 = vmul.f32 %v120_v47, %v82_v30  ;;  %v124_v63 = vmul.f32 %v120_v47, %v84_v28 }
  0x8a   :  { %110 = vrot.lane.b32.xlu1 %v99_v31, %s214_s25  ;;  %106 = vrot.lane.b32.xlu2 %v97_v33, %s214_s25  ;;  %v151_v35 = vrot.slane %v143_v34, 1  ;;  %v153_v41 = vrot.slane %v145_v40, 1 }
  0x8b   :  { %v92_v60 = vadd.f32 %v90_v45, %v87_v57  ;;  %v94_v1 = vadd.f32 %v90_v45, %v89_v59  ;;  %v130_v3 = vrot.slane %v122_v61, 1  ;;  %v132_v6 = vrot.slane %v124_v63, 1 }
  0x8c   :  { %156 = vrot.lane.b32.xlu0 %v151_v35, %s214_s25 }
  0x92   :  { %158 = vrot.lane.b32.xlu1 %v152_v38, %s214_s25  ;;  %154 = vrot.lane.b32.xlu2 %v150_v39, %s214_s25 }
  0x9a   :  { %160 = vrot.lane.b32.xlu2 %v153_v41, %s214_s25 }
  0xdc   :  { %v105_v42 = vpop.permute.xlu2 %104 }
  0xdd   :  { %v116_v50 = vadd.f32 %v105_v42, %v91_v48 }
  0xdf   :  { %v137_v52 = vadd.f32 %v129_v51, %v116_v50 }
  0xe4   :  { %v107_v46 = vpop.permute.xlu2 %106 }
  0xe5   :  { %v117_v0 = vadd.f32 %v107_v46, %v92_v60 }
  0xe7   :  { %v138_v8 = vadd.f32 %v130_v3, %v117_v0 }
  0xec   :  { %v155_v53 = vpop.permute.xlu2 %154 }
  0xed   :  { %v166_v54 = vadd.f32 %v155_v53, %v137_v52 }
  0xef   :  { %vm170_vm5 = vcmp.gt.f32.partialorder %v166_v54, -5.0  ;;  %v174_v55 = vmul.f32 -0.55, %v166_v54 }
  0xf1   :  { %v178_v56 = vsel %vm170_vm5, %v166_v54, %v174_v55 }
  0xf2   :  { %183 = vst.msk [vmem:[%s294_s3] sm:$0x3f] %vm182_vm4, %v178_v56 }
  0xf4   :  { %v109_v58 = vpop.permute.xlu0 %108  ;;  %v161_v12 = vpop.permute.xlu2 %160 }
  0xf5   :  { %v118_v9 = vadd.f32 %v109_v58, %v93_v4 }
  0xf7   :  { %v139_v18 = vadd.f32 %v131_v15, %v118_v9 }
  0xfc   :  { %v111_v2 = vpop.permute.xlu1 %110 }
  0xfd   :  { %v119_v5 = vadd.f32 %v111_v2, %v94_v1 }
  0xfe   :  { %v157_v11 = vpop.permute.xlu0 %156 }
  0xff   :  { %v140_v10 = vadd.f32 %v132_v6, %v119_v5  ;;  %v167_v13 = vadd.f32 %v157_v11, %v138_v8 }
 0x101   :  { %v169_v14 = vadd.f32 %v161_v12, %v140_v10  ;;  %vm171_vm6 = vcmp.gt.f32.partialorder %v167_v13, -5.0  ;;  %v175_v16 = vmul.f32 -0.55, %v167_v13 }
 0x103   :  { %vm173_vm7 = vcmp.gt.f32.partialorder %v169_v14, -5.0  ;;  %v177_v17 = vmul.f32 -0.55, %v169_v14  ;;  %v179_v19 = vsel %vm171_vm6, %v167_v13, %v175_v16 }
 0x104   :  { %v159_v21 = vpop.permute.xlu1 %158  ;;  %184 = vst.msk [vmem:[%s294_s3 + $0x8] sm:$0x3f] %vm182_vm4, %v179_v19 }
 0x105   :  { %v181_v22 = vsel %vm173_vm7, %v169_v14, %v177_v17  ;;  %v168_v20 = vadd.f32 %v159_v21, %v139_v18 }
 0x106   :  { %186 = vst.msk [vmem:[%s294_s3 + $0x18] sm:$0x3f] %vm182_vm4, %v181_v22 }
 0x107   :  { %vm172_vm8 = vcmp.gt.f32.partialorder %v168_v20, -5.0  ;;  %v176_v23 = vmul.f32 -0.55, %v168_v20 }
 0x109   :  { %v180_v24 = vsel %vm172_vm8, %v168_v20, %v176_v23 }
 0x10a   :  { %185 = vst.msk [vmem:[%s294_s3 + $0x10] sm:$0x3f] %vm182_vm4, %v180_v24 }
 0x10b   :  { %191 = vsyncpa [#allocation4], 1 }

</bundles_post_ra>
